<compile_context>
chip_gen: v7x
topology: tpu7x:2x2x1
jax: 0.10.0
libtpu: 0.0.40
codegen_flags: <defaults>
</compile_context>

<pallas_src>
import jax
import jax.numpy as jnp
from jax.experimental import pallas as pl
from jax.experimental.pallas import tpu as pltpu


NEG_SLOPE = 0.01  # torch.nn.functional.leaky_relu default negative_slope


def _leaky_relu(v):
    return jnp.where(v > 0, v, NEG_SLOPE * v)


def _round_up(n, m):
    return ((n + m - 1) // m) * m


def combiner_kernel(x_ref, w1_ref, b1_ref, w2_ref, b2_ref, w3_ref, b3_ref, o_ref):
    # fc1: bf16 MXU matmul, f32 accumulate; bias + leaky_relu in f32 on VPU.
    h1 = jnp.dot(x_ref[...], w1_ref[...], preferred_element_type=jnp.float32)
    h1 = _leaky_relu(h1 + b1_ref[...])
    # fc2: cast activations back to bf16 for the MXU, keep f32 accumulation.
    # Padded hidden lanes are exactly zero (zero w1 cols / b1 / w2 rows).
    h2 = jnp.dot(h1.astype(jnp.bfloat16), w2_ref[...],
                 preferred_element_type=jnp.float32)
    h2 = _leaky_relu(h2 + b2_ref[...])
    # fc3 (out_features=1): per-lane multiply + lane reduction instead of an
    # N=1 MXU matmul; b3 is a scalar in SMEM.
    y = jnp.sum(h2 * w3_ref[...], axis=-1, keepdims=True) + b3_ref[0]
    o_ref[...] = _leaky_relu(y).astype(o_ref.dtype)


def prepare_params(params):
    """One-time conversion of PyTorch-layout params into kernel-ready arrays.

    - transposes weights to (in, out) so the kernel does row-major matmuls,
    - zero-pads the hidden dim H = 3*F up to a multiple of 128 lanes,
    - casts the MXU-facing weights to bf16 (accumulation stays f32),
    - reshapes biases to broadcastable rows; b3 becomes a (1,) SMEM scalar.
    """
    w1, b1 = params["w1"], params["b1"]            # (H, F), (H,)
    w2, b2 = params["w2"], params["b2"]            # (F, H), (F,)
    w3, b3 = params["w3"], params["b3"]            # (1, F), (1,)
    H, F = w1.shape
    Hp = _round_up(H, 128)
    pad = Hp - H
    w1t = jnp.pad(w1.T.astype(jnp.float32), ((0, 0), (0, pad))).astype(jnp.bfloat16)
    b1r = jnp.pad(b1.reshape(1, H).astype(jnp.float32), ((0, 0), (0, pad)))
    w2t = jnp.pad(w2.T.astype(jnp.float32), ((0, pad), (0, 0))).astype(jnp.bfloat16)
    b2r = b2.reshape(1, F).astype(jnp.float32)
    w3r = w3.reshape(1, F).astype(jnp.float32)     # stays f32 (VPU work)
    b3s = b3.reshape(1).astype(jnp.float32)
    return {"w1t": w1t, "b1": b1r, "w2t": w2t, "b2": b2r,
            "w3row": w3r, "b3": b3s, "F": int(F), "Hp": int(Hp)}


def combiner_forward(x, kp, *, bm=256):
    """x: (B, F) float32. kp: output of prepare_params(). Returns (B, 1) f32."""
    B, F = x.shape
    assert F == kp["F"], "feature dim mismatch with prepared params"
    Hp = kp["Hp"]

    # Batch tile: fill MXU rows while keeping >=1 grid step; multiple-of-8
    # sublanes for small batches. "parallel" lets v7x shard steps across TCs.
    bm = max(8, min(bm, _round_up(B, 8)))
    grid = (pl.cdiv(B, bm),)

    # Halve the streamed HBM bytes for x; the matmul accumulates in f32 anyway.
    x_bf16 = x.astype(jnp.bfloat16)

    full = lambda i: (0, 0)
    out = pl.pallas_call(
        combiner_kernel,
        out_shape=jax.ShapeDtypeStruct((B, 1), jnp.float32),
        grid_spec=pltpu.PrefetchScalarGridSpec(
            num_scalar_prefetch=0,
            grid=grid,
            in_specs=[
                pl.BlockSpec((bm, F), lambda i: (i, 0)),             # x tile (bf16)
                pl.BlockSpec((F, Hp), full),                         # w1^T (bf16, H padded)
                pl.BlockSpec((1, Hp), full),                         # b1 row (f32, padded)
                pl.BlockSpec((Hp, F), full),                         # w2^T (bf16, H padded)
                pl.BlockSpec((1, F), full),                          # b2 row (f32)
                pl.BlockSpec((1, F), full),                          # w3 row (f32)
                pl.BlockSpec(memory_space=pltpu.MemorySpace.SMEM),   # b3 scalar
            ],
            out_specs=pl.BlockSpec((bm, 1), lambda i: (i, 0)),
        ),
        compiler_params=pltpu.CompilerParams(
            dimension_semantics=("parallel",)),
    )(x_bf16, kp["w1t"], kp["b1"], kp["w2t"], kp["b2"], kp["w3row"], kp["b3"])
    return out


def init_params(key, input_size):
    """PyTorch-layout params matching CombinerModel_3.__init__.

    Weights ~ U(-0.1, 0.1) (as set in the module); biases use the PyTorch
    nn.Linear default U(-1/sqrt(fan_in), 1/sqrt(fan_in)).
    """
    F = input_size
    H = 3 * F
    ks = jax.random.split(key, 6)
    u = lambda k, shape, lo, hi: jax.random.uniform(
        k, shape, minval=lo, maxval=hi, dtype=jnp.float32)
    return {
        "w1": u(ks[0], (H, F), -0.1, 0.1),
        "b1": u(ks[1], (H,), -1.0 / jnp.sqrt(F), 1.0 / jnp.sqrt(F)),
        "w2": u(ks[2], (F, H), -0.1, 0.1),
        "b2": u(ks[3], (F,), -1.0 / jnp.sqrt(H), 1.0 / jnp.sqrt(H)),
        "w3": u(ks[4], (1, F), -0.1, 0.1),
        "b3": u(ks[5], (1,), -1.0 / jnp.sqrt(F), 1.0 / jnp.sqrt(F)),
    }


def reference_forward(x, p):
    h1 = _leaky_relu(x @ p["w1"].T + p["b1"])
    h2 = _leaky_relu(h1 @ p["w2"].T + p["b2"])
    return _leaky_relu(h2 @ p["w3"].T + p["b3"])


if __name__ == "__main__":
    key = jax.random.PRNGKey(0)
    k_x, k_p = jax.random.split(key)

    input_size = 32                     # F=32, H=96 (padded to 128 lanes)
    params = init_params(k_p, input_size)
    kparams = prepare_params(params)

    # bf16 MXU inputs with f32 accumulation -> loosened tolerance vs f32 ref.
    ATOL = 2e-2
    RTOL = 2e-2

    # Case 1: batch equal to one full tile (single grid step).
    B1 = 256
    x1 = jax.random.normal(k_x, (B1, input_size), dtype=jnp.float32)
    y1 = jax.block_until_ready(combiner_forward(x1, kparams, bm=256))
    y1_ref = reference_forward(x1, params)
    assert y1.shape == (B1, 1)
    assert jnp.allclose(y1, y1_ref, atol=ATOL, rtol=RTOL), float(
        jnp.max(jnp.abs(y1 - y1_ref)))

    # Case 2: small ragged batch (exercises the clamped-tile / masked-store path).
    B2 = 100
    x2 = jax.random.normal(jax.random.PRNGKey(1), (B2, input_size),
                           dtype=jnp.float32)
    y2 = jax.block_until_ready(combiner_forward(x2, kparams, bm=256))
    y2_ref = reference_forward(x2, params)
    assert y2.shape == (B2, 1)
    assert jnp.allclose(y2, y2_ref, atol=ATOL, rtol=RTOL), float(
        jnp.max(jnp.abs(y2 - y2_ref)))

    print("KERNEL_OK")
</pallas_src>

<mosaic_0001>
module attributes {stable_mosaic.version = 11 : i64} {
  func.func @combiner_kernel(%arg0: i32, %arg1: memref<256x32xbf16, #tpu.memory_space<vmem>>, %arg2: memref<32x128xbf16, #tpu.memory_space<vmem>>, %arg3: memref<1x128xf32, #tpu.memory_space<vmem>>, %arg4: memref<128x32xbf16, #tpu.memory_space<vmem>>, %arg5: memref<1x32xf32, #tpu.memory_space<vmem>>, %arg6: memref<1x32xf32, #tpu.memory_space<vmem>>, %arg7: memref<1xf32, #tpu.memory_space<smem>>, %arg8: memref<256x1xf32, #tpu.memory_space<vmem>>) attributes {dimension_semantics = [#tpu.dimension_semantics<parallel>], iteration_bounds = array<i64: 1>, scalar_prefetch = 0 : i64, scratch_operands = 0 : i64, tpu.core_type = #tpu.core_type<tc>, window_params = [{transform_indices = @transform_0, window_bounds = array<i64: 256, 32>}, {pipeline_mode = #tpu.pipeline_mode<synchronous>, transform_indices = @transform_1, window_bounds = array<i64: 32, 128>}, {pipeline_mode = #tpu.pipeline_mode<synchronous>, transform_indices = @transform_2, window_bounds = array<i64: 1, 128>}, {pipeline_mode = #tpu.pipeline_mode<synchronous>, transform_indices = @transform_3, window_bounds = array<i64: 128, 32>}, {pipeline_mode = #tpu.pipeline_mode<synchronous>, transform_indices = @transform_4, window_bounds = array<i64: 1, 32>}, {pipeline_mode = #tpu.pipeline_mode<synchronous>, transform_indices = @transform_5, window_bounds = array<i64: 1, 32>}, {transform_indices = @transform_6, window_bounds = array<i64: 1>}, {transform_indices = @transform_7, window_bounds = array<i64: 256, 1>}]} {
    %c0 = arith.constant 0 : index
    %c0_0 = arith.constant 0 : index
    %0 = vector.load %arg1[%c0, %c0_0] : memref<256x32xbf16, #tpu.memory_space<vmem>>, vector<256x32xbf16>
    %c0_1 = arith.constant 0 : index
    %c0_2 = arith.constant 0 : index
    %1 = vector.load %arg2[%c0_1, %c0_2] : memref<32x128xbf16, #tpu.memory_space<vmem>>, vector<32x128xbf16>
    %cst = arith.constant dense<0.000000e+00> : vector<256x128xf32>
    %2 = tpu.matmul %0, %1, %cst {dimension_numbers = #tpu.dot_dimension_numbers<[1], [0], [0], [1], [0, 0, 1, 1], [], []>} : vector<256x32xbf16>, vector<32x128xbf16>, vector<256x128xf32> -> vector<256x128xf32>
    %c0_3 = arith.constant 0 : index
    %c0_4 = arith.constant 0 : index
    %3 = vector.load %arg3[%c0_3, %c0_4] : memref<1x128xf32, #tpu.memory_space<vmem>>, vector<1x128xf32>
    %4 = vector.broadcast %3 : vector<1x128xf32> to vector<256x128xf32>
    %5 = arith.addf %2, %4 : vector<256x128xf32>
    %cst_5 = arith.constant 0.000000e+00 : f32
    %6 = vector.broadcast %cst_5 : f32 to vector<256x128xf32>
    %7 = arith.cmpf ogt, %5, %6 : vector<256x128xf32>
    %cst_6 = arith.constant 0.00999999977 : f32
    %8 = vector.broadcast %cst_6 : f32 to vector<256x128xf32>
    %9 = arith.mulf %8, %5 : vector<256x128xf32>
    %10 = arith.select %7, %5, %9 : vector<256x128xi1>, vector<256x128xf32>
    %11 = arith.truncf %10 : vector<256x128xf32> to vector<256x128xbf16>
    %c0_7 = arith.constant 0 : index
    %c0_8 = arith.constant 0 : index
    %12 = vector.load %arg4[%c0_7, %c0_8] : memref<128x32xbf16, #tpu.memory_space<vmem>>, vector<128x32xbf16>
    %cst_9 = arith.constant dense<0.000000e+00> : vector<256x32xf32>
    %13 = tpu.matmul %11, %12, %cst_9 {dimension_numbers = #tpu.dot_dimension_numbers<[1], [0], [0], [1], [0, 0, 1, 1], [], []>} : vector<256x128xbf16>, vector<128x32xbf16>, vector<256x32xf32> -> vector<256x32xf32>
    %c0_10 = arith.constant 0 : index
    %c0_11 = arith.constant 0 : index
    %14 = vector.load %arg5[%c0_10, %c0_11] : memref<1x32xf32, #tpu.memory_space<vmem>>, vector<1x32xf32>
    %15 = vector.broadcast %14 : vector<1x32xf32> to vector<256x32xf32>
    %16 = arith.addf %13, %15 : vector<256x32xf32>
    %cst_12 = arith.constant 0.000000e+00 : f32
    %17 = vector.broadcast %cst_12 : f32 to vector<256x32xf32>
    %18 = arith.cmpf ogt, %16, %17 : vector<256x32xf32>
    %cst_13 = arith.constant 0.00999999977 : f32
    %19 = vector.broadcast %cst_13 : f32 to vector<256x32xf32>
    %20 = arith.mulf %19, %16 : vector<256x32xf32>
    %21 = arith.select %18, %16, %20 : vector<256x32xi1>, vector<256x32xf32>
    %c0_14 = arith.constant 0 : index
    %c0_15 = arith.constant 0 : index
    %22 = vector.load %arg6[%c0_14, %c0_15] : memref<1x32xf32, #tpu.memory_space<vmem>>, vector<1x32xf32>
    %23 = vector.broadcast %22 : vector<1x32xf32> to vector<256x32xf32>
    %24 = arith.mulf %21, %23 : vector<256x32xf32>
    %cst_16 = arith.constant dense<0.000000e+00> : vector<256xf32>
    %25 = vector.multi_reduction <add>, %24, %cst_16 [1] : vector<256x32xf32> to vector<256xf32>
    %26 = vector.shape_cast %25 : vector<256xf32> to vector<256x1xf32>
    %c0_17 = arith.constant 0 : index
    %27 = memref.load %arg7[%c0_17] : memref<1xf32, #tpu.memory_space<smem>>
    %28 = vector.broadcast %27 : f32 to vector<256x1xf32>
    %29 = arith.addf %26, %28 : vector<256x1xf32>
    %cst_18 = arith.constant 0.000000e+00 : f32
    %30 = vector.broadcast %cst_18 : f32 to vector<256x1xf32>
    %31 = arith.cmpf ogt, %29, %30 : vector<256x1xf32>
    %cst_19 = arith.constant 0.00999999977 : f32
    %32 = vector.broadcast %cst_19 : f32 to vector<256x1xf32>
    %33 = arith.mulf %32, %29 : vector<256x1xf32>
    %34 = arith.select %31, %29, %33 : vector<256x1xi1>, vector<256x1xf32>
    %c0_20 = arith.constant 0 : index
    %c0_21 = arith.constant 0 : index
    %35 = vector.load %arg8[%c0_20, %c0_21] : memref<256x1xf32, #tpu.memory_space<vmem>>, vector<256x1xf32>
    tpu.vector_store %arg8[%c0_20, %c0_21], %34 {strides = array<i32>} : memref<256x1xf32, #tpu.memory_space<vmem>>, vector<256x1xf32>,
    return
  }
  func.func @transform_0(%arg0: i32) -> (i32, i32) {
    %c0_i32 = arith.constant 0 : i32
    %c0_i32_0 = arith.constant 0 : i32
    return %arg0, %c0_i32 : i32, i32
  }
  func.func @transform_1(%arg0: i32) -> (i32, i32) {
    %c0_i32 = arith.constant 0 : i32
    %c0_i32_0 = arith.constant 0 : i32
    %c0_i32_1 = arith.constant 0 : i32
    return %c0_i32, %c0_i32_0 : i32, i32
  }
  func.func @transform_2(%arg0: i32) -> (i32, i32) {
    %c0_i32 = arith.constant 0 : i32
    %c0_i32_0 = arith.constant 0 : i32
    %c0_i32_1 = arith.constant 0 : i32
    return %c0_i32, %c0_i32_0 : i32, i32
  }
  func.func @transform_3(%arg0: i32) -> (i32, i32) {
    %c0_i32 = arith.constant 0 : i32
    %c0_i32_0 = arith.constant 0 : i32
    %c0_i32_1 = arith.constant 0 : i32
    return %c0_i32, %c0_i32_0 : i32, i32
  }
  func.func @transform_4(%arg0: i32) -> (i32, i32) {
    %c0_i32 = arith.constant 0 : i32
    %c0_i32_0 = arith.constant 0 : i32
    %c0_i32_1 = arith.constant 0 : i32
    return %c0_i32, %c0_i32_0 : i32, i32
  }
  func.func @transform_5(%arg0: i32) -> (i32, i32) {
    %c0_i32 = arith.constant 0 : i32
    %c0_i32_0 = arith.constant 0 : i32
    %c0_i32_1 = arith.constant 0 : i32
    return %c0_i32, %c0_i32_0 : i32, i32
  }
  func.func @transform_6(%arg0: i32) -> i32 {
    %c0_i32 = arith.constant 0 : i32
    %c0_i32_0 = arith.constant 0 : i32
    return %c0_i32 : i32
  }
  func.func @transform_7(%arg0: i32) -> (i32, i32) {
    %c0_i32 = arith.constant 0 : i32
    %c0_i32_0 = arith.constant 0 : i32
    return %arg0, %c0_i32 : i32, i32
  }
}

</mosaic_0001>

<bundles_post_ra>
// kernel: tpu_custom_call.1
= control target key start
LH: loop header
LB: loop body
LE: loop exit
PB: predicated region body
PF: predicated region fallthrough
CT: control target
= control target key end

     0   :  { %vm163_vm0 = vcmask 261120   ;;  %s1771_s1 = inlined_call_operand.vmem [shape: bf16[32,128], index: 1, kind: input, shape index: {}]   ;;  %s1772_s0 = inlined_call_operand.vmem [shape: bf16[256,32], index: 0, kind: input, shape index: {}]   ;;  %s1773_s3 = inlined_call_operand.vmem [shape: bf16[128,32], index: 3, kind: input, shape index: {}]   ;;  %s1774_s2 = inlined_call_operand.vmem [shape: f32[1,128], index: 2, kind: input, shape index: {}]   ;;  %s1775_s4 = inlined_call_operand.vmem [shape: f32[1,32], index: 4, kind: input, shape index: {}]   ;;  %s1776_s5 = inlined_call_operand.vmem [shape: f32[1,32], index: 5, kind: input, shape index: {}]   ;;  %s1777_s6 = inlined_call_operand.<no memory space> [shape: f32[1], index: 6, kind: input, shape index: {}]   ;;  %s1778_s7 = inlined_call_operand.vmem [shape: f32[256,1], index: 7, kind: output, shape index: {}]  }
   0x1   :  { %v1302_v0 = vld [vmem:[%s1771_s1] sm:$0xff]   ;;  %v1303_v1 = vld [vmem:[%s1771_s1 + $0x8] sm:$0xff]   ;;  %v1306_v4 = vld [vmem:[%s1772_s0 + $0x10] sm:$0xff]  }
   0x2   :  { %1202 = vmatprep.subr.bf16.mxu0 %v1302_v0  ;;  %v1304_v2 = vld [vmem:[%s1772_s0] sm:$0xff]   ;;  %v1305_v3 = vld [vmem:[%s1772_s0 + $0x8] sm:$0xff]   ;;  %v1307_v5 = vld [vmem:[%s1772_s0 + $0x18] sm:$0xff]  }
   0x3   :  { %1203 = vmatpush3.bf16.msra.mxu0 %v1302_v0  ;;  %1206 = vmatprep.mubr.msk.bf16.mxu0 %vm163_vm0, %v1304_v2  ;;  %v1308_v6 = vld [vmem:[%s1772_s0 + $0x20] sm:$0xff]   ;;  %v1321_v8 = vld [vmem:[%s1773_s3 + $0x8] sm:$0xff]   ;;  %v1322_v10 = vld [vmem:[%s1773_s3 + $0x10] sm:$0xff]  }
   0x4   :  { %1204 = vmatprep.subr.bf16.mxu0 %v1303_v1  ;;  %v1320_v7 = vld [vmem:[%s1773_s3] sm:$0xff]   ;;  %v1309_v9 = vld [vmem:[%s1772_s0 + $0x28] sm:$0xff]   ;;  %v1310_v11 = vld [vmem:[%s1772_s0 + $0x30] sm:$0xff]  }
   0x5   :  { %1286 = vmatprep.subr.bf16.mxu1 %v1320_v7  ;;  %v1323_v12 = vld [vmem:[%s1773_s3 + $0x18] sm:$0xff]   ;;  %v1324_v14 = vld [vmem:[%s1773_s3 + $0x20] sm:$0xff]   ;;  %v1325_v16 = vld [vmem:[%s1773_s3 + $0x28] sm:$0xff]  }
   0x6   :  { %1294 = vmatpush3.bf16.msra.mxu1 %v1320_v7  ;;  %v1311_v13 = vld [vmem:[%s1772_s0 + $0x38] sm:$0xff]   ;;  %v1312_v15 = vld [vmem:[%s1772_s0 + $0x40] sm:$0xff]   ;;  %v1313_v17 = vld [vmem:[%s1772_s0 + $0x48] sm:$0xff]  }
   0x7   :  { %1205 = vmatpush3.bf16.msra.mxu0 %v1303_v1  ;;  %1287 = vmatprep.subr.bf16.mxu1 %v1321_v8  ;;  %v1326_v18 = vld [vmem:[%s1773_s3 + $0x30] sm:$0xff]   ;;  %v1315_v20 = vld [vmem:[%s1772_s0 + $0x58] sm:$0xff]   ;;  %v1316_v21 = vld [vmem:[%s1772_s0 + $0x60] sm:$0xff]  }
   0x8   :  { %1238 = vmatprep.subr.bf16.mxu0 %v1320_v7  ;;  %v1314_v19 = vld [vmem:[%s1772_s0 + $0x50] sm:$0xff]   ;;  %v1317_v22 = vld [vmem:[%s1772_s0 + $0x68] sm:$0xff]   ;;  %v1319_v24 = vld [vmem:[%s1772_s0 + $0x78] sm:$0xff]  }
   0x9   :  { %v1318_v23 = vld [vmem:[%s1772_s0 + $0x70] sm:$0xff]   ;;  %v1327_v25 = vld [vmem:[%s1773_s3 + $0x38] sm:$0xff]   ;;  %v1465_v26 = vld [vmem:[%s1774_s2] ss:$0 sm:$0xff] }
   0xa   :  { %1207 = vmatmul.mubr.msk.bf16.vlgmr.msra.gmra.mrb[0].mxu0 %vm163_vm0, %v1305_v3  ;;  %1295 = vmatpush3.bf16.msra.mxu1 %v1321_v8 }
   0xb   :  { %1210 = vmatprep.mubr.msk.bf16.mxu0 %vm163_vm0, %v1306_v4  ;;  %1239 = vmatpush3.bf16.msra.mxu0 %v1320_v7 }
   0xc   :  { %1240 = vmatprep.subr.bf16.mxu0 %v1321_v8  ;;  %1288 = vmatprep.subr.bf16.mxu1 %v1322_v10 }
   0xe   :  { %1296 = vmatpush3.bf16.msra.mxu1 %v1322_v10 }
   0xf   :  { %1241 = vmatpush3.bf16.msra.mxu0 %v1321_v8  ;;  %1289 = vmatprep.subr.bf16.mxu1 %v1323_v12 }
  0x10   :  { %1242 = vmatprep.subr.bf16.mxu0 %v1322_v10 }
  0x12   :  { %1211 = vmatmul.mubr.msk.bf16.gmra.mrb[4].mxu0 %vm163_vm0, %v1307_v5  ;;  %1297 = vmatpush3.bf16.msra.mxu1 %v1323_v12 }
  0x13   :  { %1214 = vmatprep.mubr.msk.bf16.mxu0 %vm163_vm0, %v1308_v6  ;;  %1243 = vmatpush3.bf16.msra.mxu0 %v1322_v10 }
  0x14   :  { %1244 = vmatprep.subr.bf16.mxu0 %v1323_v12  ;;  %1290 = vmatprep.subr.bf16.mxu1 %v1324_v14 }
  0x16   :  { %1298 = vmatpush3.bf16.msra.mxu1 %v1324_v14 }
  0x17   :  { %1245 = vmatpush3.bf16.msra.mxu0 %v1323_v12  ;;  %1291 = vmatprep.subr.bf16.mxu1 %v1325_v16 }
  0x18   :  { %1246 = vmatprep.subr.bf16.mxu0 %v1324_v14 }
  0x1a   :  { %1215 = vmatmul.mubr.msk.bf16.gmra.mrb[8].mxu0 %vm163_vm0, %v1309_v9  ;;  %1299 = vmatpush3.bf16.msra.mxu1 %v1325_v16 }
  0x1b   :  { %1218 = vmatprep.mubr.msk.bf16.mxu0 %vm163_vm0, %v1310_v11  ;;  %1247 = vmatpush3.bf16.msra.mxu0 %v1324_v14 }
  0x1c   :  { %1248 = vmatprep.subr.bf16.mxu0 %v1325_v16  ;;  %1292 = vmatprep.subr.bf16.mxu1 %v1326_v18 }
  0x1e   :  { %1300 = vmatpush3.bf16.msra.mxu1 %v1326_v18 }
  0x1f   :  { %1249 = vmatpush3.bf16.msra.mxu0 %v1325_v16  ;;  %1293 = vmatprep.subr.bf16.mxu1 %v1327_v25 }
  0x20   :  { %1250 = vmatprep.subr.bf16.mxu0 %v1326_v18 }
  0x22   :  { %1219 = vmatmul.mubr.msk.bf16.gmra.mrb[12].mxu0 %vm163_vm0, %v1311_v13  ;;  %1301 = vmatpush3.bf16.msra.mxu1 %v1327_v25 }
  0x23   :  { %1222 = vmatprep.mubr.msk.bf16.mxu0 %vm163_vm0, %v1312_v15  ;;  %1251 = vmatpush3.bf16.msra.mxu0 %v1326_v18 }
  0x24   :  { %1252 = vmatprep.subr.bf16.mxu0 %v1327_v25 }
  0x27   :  { %1253 = vmatpush3.bf16.msra.mxu0 %v1327_v25 }
  0x2a   :  { %1223 = vmatmul.mubr.msk.bf16.gmra.mrb[16].mxu0 %vm163_vm0, %v1313_v17 }
  0x2b   :  { %1226 = vmatprep.mubr.msk.bf16.mxu0 %vm163_vm0, %v1314_v19 }
  0x32   :  { %1227 = vmatmul.mubr.msk.bf16.gmra.mrb[20].mxu0 %vm163_vm0, %v1315_v20 }
  0x33   :  { %1230 = vmatprep.mubr.msk.bf16.mxu0 %vm163_vm0, %v1316_v21 }
  0x3a   :  { %1231 = vmatmul.mubr.msk.bf16.gmra.mrb[24].mxu0 %vm163_vm0, %v1317_v22 }
  0x3b   :  { %1234 = vmatprep.mubr.msk.bf16.mxu0 %vm163_vm0, %v1318_v23 }
  0x42   :  { %1235 = vmatmul.mubr.msk.bf16.gmra.mrb[28].mxu0 %vm163_vm0, %v1319_v24 }
  0xdd   :  { %v1208_v27 = vpop.f32.mrb[0].mxu0 }
  0xde   :  { %v255_v28 = vadd.f32 %v1208_v27, %v1465_v26  ;;  %v246_v29 = vpop.f32.mrb[1].mxu0 }
  0xdf   :  { %v247_v30 = vadd.f32 %v1465_v26, %v246_v29  ;;  %v1209_v31 = vpop.f32.mrb[2].mxu0 }
  0xe0   :  { %v407_v32 = vmul.f32 0.01, %v255_v28  ;;  %v258_v33 = vadd.f32 %v1209_v31, %v1465_v26  ;;  %v249_v34 = vpop.f32.mrb[3].mxu0  ;;  %vm375_vm1 = vcmp.gt.f32.partialorder %v255_v28, 0.0 }
  0xe1   :  { %v405_v35 = vmul.f32 0.01, %v247_v30  ;;  %v250_v36 = vadd.f32 %v1465_v26, %v249_v34  ;;  %vm373_vm2 = vcmp.gt.f32.partialorder %v247_v30, 0.0 }
  0xe2   :  { %vm376_vm3 = vcmp.gt.f32.partialorder %v258_v33, 0.0  ;;  %v408_v37 = vmul.f32 0.01, %v258_v33  ;;  %v439_v39 = vsel %vm375_vm1, %v255_v28, %v407_v32 }
  0xe3   :  { %vm374_vm4 = vcmp.gt.f32.partialorder %v250_v36, 0.0  ;;  %v406_v38 = vmul.f32 0.01, %v250_v36  ;;  %v437_v43 = vsel %vm373_vm2, %v247_v30, %v405_v35 }
  0xe4   :  { %v440_v40 = vsel %vm376_vm3, %v258_v33, %v408_v37 }
  0xe5   :  { %v470_v41 = vpack.c.bf16 %v440_v40, %v439_v39  ;;  %v1212_v42 = vpop.f32.mrb[4].mxu0  ;;  %v438_v44 = vsel %vm374_vm4, %v250_v36, %v406_v38 }
  0xe6   :  { %v271_v45 = vadd.f32 %v1212_v42, %v1465_v26  ;;  %v262_v46 = vpop.f32.mrb[5].mxu0  ;;  %v469_v47 = vpack.c.bf16 %v438_v44, %v437_v43 }
  0xe7   :  { %v263_v48 = vadd.f32 %v1465_v26, %v262_v46  ;;  %v1213_v49 = vpop.f32.mrb[6].mxu0 }
  0xe8   :  { %v411_v50 = vmul.f32 0.01, %v271_v45  ;;  %v274_v51 = vadd.f32 %v1213_v49, %v1465_v26  ;;  %v265_v52 = vpop.f32.mrb[7].mxu0  ;;  %1254 = vmatprep.mubr.bf16.mxu0 %v469_v47  ;;  %vm379_vm5 = vcmp.gt.f32.partialorder %v271_v45, 0.0 }
  0xe9   :  { %v409_v53 = vmul.f32 0.01, %v263_v48  ;;  %v266_v54 = vadd.f32 %v1465_v26, %v265_v52  ;;  %1255 = vmatmul.mubr.bf16.vlgmr.msra.gmra.mrb[32].mxu0 %v470_v41  ;;  %vm377_vm7 = vcmp.gt.f32.partialorder %v263_v48, 0.0 }
  0xea   :  { %vm380_vm6 = vcmp.gt.f32.partialorder %v274_v51, 0.0  ;;  %v412_v55 = vmul.f32 0.01, %v274_v51  ;;  %v443_v57 = vsel %vm379_vm5, %v271_v45, %v411_v50 }
  0xeb   :  { %v410_v56 = vmul.f32 0.01, %v266_v54  ;;  %vm378_vm8 = vcmp.gt.f32.partialorder %v266_v54, 0.0  ;;  %v441_v60 = vsel %vm377_vm7, %v263_v48, %v409_v53 }
  0xec   :  { %v444_v58 = vsel %vm380_vm6, %v274_v51, %v412_v55 }
  0xed   :  { %v1216_v59 = vpop.f32.mrb[8].mxu0  ;;  %v442_v61 = vsel %vm378_vm8, %v266_v54, %v410_v56  ;;  %v472_v62 = vpack.c.bf16 %v444_v58, %v443_v57 }
  0xee   :  { %v287_v63 = vadd.f32 %v1216_v59, %v1465_v26  ;;  %v278_v0 = vpop.f32.mrb[9].mxu0  ;;  %v471_v1 = vpack.c.bf16 %v442_v61, %v441_v60 }
  0xef   :  { %v279_v2 = vadd.f32 %v1465_v26, %v278_v0  ;;  %v1217_v3 = vpop.f32.mrb[10].mxu0 }
  0xf0   :  { %v415_v4 = vmul.f32 0.01, %v287_v63  ;;  %v290_v5 = vadd.f32 %v1217_v3, %v1465_v26  ;;  %v281_v6 = vpop.f32.mrb[11].mxu0  ;;  %1258 = vmatprep.mubr.bf16.mxu1 %v471_v1  ;;  %vm383_vm9 = vcmp.gt.f32.partialorder %v287_v63, 0.0 }
  0xf1   :  { %v413_v7 = vmul.f32 0.01, %v279_v2  ;;  %v282_v8 = vadd.f32 %v1465_v26, %v281_v6  ;;  %1259 = vmatmul.mubr.bf16.vlgmr.msra.gmra.mrb[0].mxu1 %v472_v62  ;;  %vm381_vm10 = vcmp.gt.f32.partialorder %v279_v2, 0.0 }
  0xf2   :  { %vm384_vm11 = vcmp.gt.f32.partialorder %v290_v5, 0.0  ;;  %v416_v9 = vmul.f32 0.01, %v290_v5  ;;  %v447_v11 = vsel %vm383_vm9, %v287_v63, %v415_v4 }
  0xf3   :  { %vm382_vm12 = vcmp.gt.f32.partialorder %v282_v8, 0.0  ;;  %v414_v10 = vmul.f32 0.01, %v282_v8  ;;  %v445_v14 = vsel %vm381_vm10, %v279_v2, %v413_v7 }
  0xf4   :  { %v448_v12 = vsel %vm384_vm11, %v290_v5, %v416_v9 }
  0xf5   :  { %v1220_v13 = vpop.f32.mrb[12].mxu0  ;;  %v446_v15 = vsel %vm382_vm12, %v282_v8, %v414_v10  ;;  %v474_v16 = vpack.c.bf16 %v448_v12, %v447_v11 }
  0xf6   :  { %v303_v17 = vadd.f32 %v1220_v13, %v1465_v26  ;;  %v294_v18 = vpop.f32.mrb[13].mxu0  ;;  %v473_v19 = vpack.c.bf16 %v446_v15, %v445_v14 }
  0xf7   :  { %v295_v20 = vadd.f32 %v1465_v26, %v294_v18  ;;  %v1221_v21 = vpop.f32.mrb[14].mxu0 }
  0xf8   :  { %v419_v22 = vmul.f32 0.01, %v303_v17  ;;  %v306_v23 = vadd.f32 %v1221_v21, %v1465_v26  ;;  %v297_v24 = vpop.f32.mrb[15].mxu0  ;;  %1262 = vmatprep.mubr.bf16.mxu1 %v473_v19  ;;  %vm387_vm13 = vcmp.gt.f32.partialorder %v303_v17, 0.0 }
  0xf9   :  { %v417_v25 = vmul.f32 0.01, %v295_v20  ;;  %v298_v27 = vadd.f32 %v1465_v26, %v297_v24  ;;  %1263 = vmatmul.mubr.bf16.gmra.mrb[4].mxu1 %v474_v16  ;;  %vm385_vm14 = vcmp.gt.f32.partialorder %v295_v20, 0.0 }
  0xfa   :  { %vm388_vm15 = vcmp.gt.f32.partialorder %v306_v23, 0.0  ;;  %v420_v28 = vmul.f32 0.01, %v306_v23  ;;  %v451_v30 = vsel %vm387_vm13, %v303_v17, %v419_v22 }
  0xfb   :  { %vm386_vm1 = vcmp.gt.f32.partialorder %v298_v27, 0.0  ;;  %v418_v29 = vmul.f32 0.01, %v298_v27  ;;  %v449_v33 = vsel %vm385_vm14, %v295_v20, %v417_v25 }
  0xfc   :  { %v452_v31 = vsel %vm388_vm15, %v306_v23, %v420_v28 }
  0xfd   :  { %v1224_v32 = vpop.f32.mrb[16].mxu0  ;;  %v450_v34 = vsel %vm386_vm1, %v298_v27, %v418_v29  ;;  %v476_v35 = vpack.c.bf16 %v452_v31, %v451_v30 }
  0xfe   :  { %v319_v36 = vadd.f32 %v1224_v32, %v1465_v26  ;;  %v310_v37 = vpop.f32.mrb[17].mxu0  ;;  %v475_v38 = vpack.c.bf16 %v450_v34, %v449_v33 }
  0xff   :  { %v311_v39 = vadd.f32 %v1465_v26, %v310_v37  ;;  %v1225_v40 = vpop.f32.mrb[18].mxu0 }
 0x100   :  { %v423_v41 = vmul.f32 0.01, %v319_v36  ;;  %v322_v42 = vadd.f32 %v1225_v40, %v1465_v26  ;;  %v313_v43 = vpop.f32.mrb[19].mxu0  ;;  %1266 = vmatprep.mubr.bf16.mxu1 %v475_v38  ;;  %vm391_vm2 = vcmp.gt.f32.partialorder %v319_v36, 0.0 }
 0x101   :  { %v421_v44 = vmul.f32 0.01, %v311_v39  ;;  %v314_v45 = vadd.f32 %v1465_v26, %v313_v43  ;;  %1267 = vmatmul.mubr.bf16.gmra.mrb[8].mxu1 %v476_v35  ;;  %vm389_vm3 = vcmp.gt.f32.partialorder %v311_v39, 0.0 }
 0x102   :  { %vm392_vm4 = vcmp.gt.f32.partialorder %v322_v42, 0.0  ;;  %v424_v46 = vmul.f32 0.01, %v322_v42  ;;  %v455_v48 = vsel %vm391_vm2, %v319_v36, %v423_v41 }
 0x103   :  { %vm390_vm5 = vcmp.gt.f32.partialorder %v314_v45, 0.0  ;;  %v422_v47 = vmul.f32 0.01, %v314_v45  ;;  %v453_v51 = vsel %vm389_vm3, %v311_v39, %v421_v44 }
 0x104   :  { %v456_v49 = vsel %vm392_vm4, %v322_v42, %v424_v46 }
 0x105   :  { %v1228_v50 = vpop.f32.mrb[20].mxu0  ;;  %v454_v52 = vsel %vm390_vm5, %v314_v45, %v422_v47  ;;  %v478_v53 = vpack.c.bf16 %v456_v49, %v455_v48  ;;  %v1502_v45 = vld [vmem:[%s1775_s4] ss:$0 sm:$0xff] }
 0x106   :  { %v335_v54 = vadd.f32 %v1228_v50, %v1465_v26  ;;  %v326_v55 = vpop.f32.mrb[21].mxu0  ;;  %v477_v56 = vpack.c.bf16 %v454_v52, %v453_v51 }
 0x107   :  { %v327_v57 = vadd.f32 %v1465_v26, %v326_v55  ;;  %v1229_v58 = vpop.f32.mrb[22].mxu0 }
 0x108   :  { %v427_v59 = vmul.f32 0.01, %v335_v54  ;;  %v338_v60 = vadd.f32 %v1229_v58, %v1465_v26  ;;  %v329_v61 = vpop.f32.mrb[23].mxu0  ;;  %1270 = vmatprep.mubr.bf16.mxu1 %v477_v56  ;;  %vm395_vm6 = vcmp.gt.f32.partialorder %v335_v54, 0.0 }
 0x109   :  { %v425_v62 = vmul.f32 0.01, %v327_v57  ;;  %v330_v63 = vadd.f32 %v1465_v26, %v329_v61  ;;  %1271 = vmatmul.mubr.bf16.gmra.mrb[12].mxu1 %v478_v53  ;;  %vm393_vm7 = vcmp.gt.f32.partialorder %v327_v57, 0.0  ;;  %v1510_v53 = vld [vmem:[%s1776_s5] ss:$0 sm:$0xff] }
 0x10a   :  { %vm396_vm8 = vcmp.gt.f32.partialorder %v338_v60, 0.0  ;;  %v428_v0 = vmul.f32 0.01, %v338_v60  ;;  %v459_v2 = vsel %vm395_vm6, %v335_v54, %v427_v59 }
 0x10b   :  { %vm394_vm9 = vcmp.gt.f32.partialorder %v330_v63, 0.0  ;;  %v426_v1 = vmul.f32 0.01, %v330_v63  ;;  %v457_v5 = vsel %vm393_vm7, %v327_v57, %v425_v62 }
 0x10c   :  { %v460_v3 = vsel %vm396_vm8, %v338_v60, %v428_v0 }
 0x10d   :  { %v1232_v4 = vpop.f32.mrb[24].mxu0  ;;  %v458_v6 = vsel %vm394_vm9, %v330_v63, %v426_v1  ;;  %v480_v7 = vpack.c.bf16 %v460_v3, %v459_v2 }
 0x10e   :  { %v351_v8 = vadd.f32 %v1232_v4, %v1465_v26  ;;  %v342_v9 = vpop.f32.mrb[25].mxu0  ;;  %v479_v10 = vpack.c.bf16 %v458_v6, %v457_v5 }
 0x10f   :  { %v343_v11 = vadd.f32 %v1465_v26, %v342_v9  ;;  %v1233_v12 = vpop.f32.mrb[26].mxu0 }
 0x110   :  { %v431_v13 = vmul.f32 0.01, %v351_v8  ;;  %v354_v14 = vadd.f32 %v1233_v12, %v1465_v26  ;;  %v345_v15 = vpop.f32.mrb[27].mxu0  ;;  %1274 = vmatprep.mubr.bf16.mxu1 %v479_v10  ;;  %vm399_vm10 = vcmp.gt.f32.partialorder %v351_v8, 0.0 }
 0x111   :  { %v429_v16 = vmul.f32 0.01, %v343_v11  ;;  %v346_v17 = vadd.f32 %v1465_v26, %v345_v15  ;;  %1275 = vmatmul.mubr.bf16.gmra.mrb[16].mxu1 %v480_v7  ;;  %vm397_vm11 = vcmp.gt.f32.partialorder %v343_v11, 0.0 }
 0x112   :  { %vm400_vm12 = vcmp.gt.f32.partialorder %v354_v14, 0.0  ;;  %v432_v18 = vmul.f32 0.01, %v354_v14  ;;  %v463_v20 = vsel %vm399_vm10, %v351_v8, %v431_v13 }
 0x113   :  { %vm398_vm13 = vcmp.gt.f32.partialorder %v346_v17, 0.0  ;;  %v430_v19 = vmul.f32 0.01, %v346_v17  ;;  %v461_v23 = vsel %vm397_vm11, %v343_v11, %v429_v16 }
 0x114   :  { %v464_v21 = vsel %vm400_vm12, %v354_v14, %v432_v18 }
 0x115   :  { %v1236_v22 = vpop.f32.mrb[28].mxu0  ;;  %v462_v24 = vsel %vm398_vm13, %v346_v17, %v430_v19  ;;  %v482_v25 = vpack.c.bf16 %v464_v21, %v463_v20 }
 0x116   :  { %v367_v27 = vadd.f32 %v1236_v22, %v1465_v26  ;;  %v358_v28 = vpop.f32.mrb[29].mxu0  ;;  %v481_v29 = vpack.c.bf16 %v462_v24, %v461_v23 }
 0x117   :  { %v359_v30 = vadd.f32 %v1465_v26, %v358_v28  ;;  %v1237_v31 = vpop.f32.mrb[30].mxu0 }
 0x118   :  { %v435_v32 = vmul.f32 0.01, %v367_v27  ;;  %v370_v33 = vadd.f32 %v1237_v31, %v1465_v26  ;;  %v361_v34 = vpop.f32.mrb[31].mxu0  ;;  %1278 = vmatprep.mubr.bf16.mxu1 %v481_v29  ;;  %vm403_vm14 = vcmp.gt.f32.partialorder %v367_v27, 0.0 }
 0x119   :  { %v433_v35 = vmul.f32 0.01, %v359_v30  ;;  %v362_v36 = vadd.f32 %v1465_v26, %v361_v34  ;;  %1279 = vmatmul.mubr.bf16.gmra.mrb[20].mxu1 %v482_v25  ;;  %vm401_vm15 = vcmp.gt.f32.partialorder %v359_v30, 0.0 }
 0x11a   :  { %vm404_vm1 = vcmp.gt.f32.partialorder %v370_v33, 0.0  ;;  %v436_v37 = vmul.f32 0.01, %v370_v33  ;;  %v467_v39 = vsel %vm403_vm14, %v367_v27, %v435_v32 }
 0x11b   :  { %vm402_vm2 = vcmp.gt.f32.partialorder %v362_v36, 0.0  ;;  %v434_v38 = vmul.f32 0.01, %v362_v36  ;;  %v465_v41 = vsel %vm401_vm15, %v359_v30, %v433_v35 }
 0x11c   :  { %v468_v40 = vsel %vm404_vm1, %v370_v33, %v436_v37 }
 0x11d   :  { %v466_v42 = vsel %vm402_vm2, %v362_v36, %v434_v38  ;;  %v484_v43 = vpack.c.bf16 %v468_v40, %v467_v39 }
 0x11e   :  { %v483_v44 = vpack.c.bf16 %v466_v42, %v465_v41 }
 0x120   :  { %1282 = vmatprep.mubr.bf16.mxu1 %v483_v44 }
 0x121   :  { %1283 = vmatmul.mubr.bf16.gmra.mrb[24].mxu1 %v484_v43 }
 0x1bc   :  { %v1256_v26 = vpop.f32.mrb[32].mxu0 }
 0x1bd   :  { %v599_v46 = vadd.f32 %v1256_v26, %v1502_v45  ;;  %v590_v47 = vpop.f32.mrb[33].mxu0 }
 0x1be   :  { %v591_v48 = vadd.f32 %v1502_v45, %v590_v47  ;;  %v1257_v49 = vpop.f32.mrb[34].mxu0 }
 0x1bf   :  { %v751_v50 = vmul.f32 0.01, %v599_v46  ;;  %v602_v51 = vadd.f32 %v1257_v49, %v1502_v45  ;;  %v593_v52 = vpop.f32.mrb[35].mxu0  ;;  %vm719_vm3 = vcmp.gt.f32.partialorder %v599_v46, 0.0 }
 0x1c0   :  { %v749_v54 = vmul.f32 0.01, %v591_v48  ;;  %v594_v55 = vadd.f32 %v1502_v45, %v593_v52  ;;  %vm717_vm4 = vcmp.gt.f32.partialorder %v591_v48, 0.0 }
 0x1c1   :  { %vm720_vm5 = vcmp.gt.f32.partialorder %v602_v51, 0.0  ;;  %v752_v56 = vmul.f32 0.01, %v602_v51  ;;  %v783_v57 = vsel %vm719_vm3, %v599_v46, %v751_v50 }
 0x1c2   :  { %vm718_vm6 = vcmp.gt.f32.partialorder %v594_v55, 0.0  ;;  %v750_v58 = vmul.f32 0.01, %v594_v55  ;;  %v822_v59 = vmul.f32 %v1510_v53, %v783_v57  ;;  %v781_v60 = vsel %vm717_vm4, %v591_v48, %v749_v54 }
 0x1c3   :  { %v820_v61 = vmul.f32 %v1510_v53, %v781_v60  ;;  %v784_v62 = vsel %vm720_vm5, %v602_v51, %v752_v56 }
 0x1c4   :  { %v1260_v63 = vpop.f32.mrb[0].mxu1  ;;  %v858_v0 = vsel %vm163_vm0, %v822_v59, 0.0  ;;  %v823_v1 = vmul.f32 %v1510_v53, %v784_v62  ;;  %v782_v2 = vsel %vm718_vm6, %v594_v55, %v750_v58 }
 0x1c5   :  { %v615_v3 = vadd.f32 %v1260_v63, %v1502_v45  ;;  %v606_v4 = vpop.f32.mrb[1].mxu1  ;;  %859 = vadd.xlane.f32.xlu1 %v858_v0  ;;  %v852_v5 = vsel %vm163_vm0, %v820_v61, 0.0  ;;  %v821_v6 = vmul.f32 %v1510_v53, %v782_v2 }
 0x1c6   :  { %v607_v7 = vadd.f32 %v1502_v45, %v606_v4  ;;  %v1261_v8 = vpop.f32.mrb[2].mxu1  ;;  %853 = vadd.xlane.f32.xlu0 %v852_v5  ;;  %v861_v14 = vsel %vm163_vm0, %v823_v1, 0.0 }
 0x1c7   :  { %vm723_vm7 = vcmp.gt.f32.partialorder %v615_v3, 0.0  ;;  %v755_v9 = vmul.f32 0.01, %v615_v3  ;;  %v618_v10 = vadd.f32 %v1261_v8, %v1502_v45  ;;  %v609_v11 = vpop.f32.mrb[3].mxu1  ;;  %v855_v16 = vsel %vm163_vm0, %v821_v6, 0.0 }
 0x1c8   :  { %vm721_vm8 = vcmp.gt.f32.partialorder %v607_v7, 0.0  ;;  %v753_v12 = vmul.f32 0.01, %v607_v7  ;;  %v610_v13 = vadd.f32 %v1502_v45, %v609_v11 }
 0x1c9   :  { %vm724_vm9 = vcmp.gt.f32.partialorder %v618_v10, 0.0  ;;  %v756_v15 = vmul.f32 0.01, %v618_v10  ;;  %862 = vadd.xlane.f32.xlu1 %v861_v14  ;;  %v787_v17 = vsel %vm723_vm7, %v615_v3, %v755_v9 }
 0x1ca   :  { %vm722_vm10 = vcmp.gt.f32.partialorder %v610_v13, 0.0  ;;  %v754_v18 = vmul.f32 0.01, %v610_v13  ;;  %856 = vadd.xlane.f32.xlu0 %v855_v16  ;;  %v826_v19 = vmul.f32 %v1510_v53, %v787_v17  ;;  %v785_v20 = vsel %vm721_vm8, %v607_v7, %v753_v12 }
 0x1cb   :  { %v788_v21 = vsel %vm724_vm9, %v618_v10, %v756_v15  ;;  %v824_v25 = vmul.f32 %v1510_v53, %v785_v20 }
 0x1cc   :  { %v1264_v22 = vpop.f32.mrb[4].mxu1  ;;  %v870_v23 = vsel %vm163_vm0, %v826_v19, 0.0  ;;  %v827_v24 = vmul.f32 %v1510_v53, %v788_v21  ;;  %v786_v27 = vsel %vm722_vm10, %v610_v13, %v754_v18 }
 0x1cd   :  { %v631_v28 = vadd.f32 %v1264_v22, %v1502_v45  ;;  %v622_v29 = vpop.f32.mrb[5].mxu1  ;;  %v825_v30 = vmul.f32 %v1510_v53, %v786_v27  ;;  %v864_v39 = vsel %vm163_vm0, %v824_v25, 0.0 }
 0x1ce   :  { %v623_v31 = vadd.f32 %v1502_v45, %v622_v29  ;;  %v1265_v32 = vpop.f32.mrb[6].mxu1  ;;  %871 = vadd.xlane.f32.xlu0 %v870_v23  ;;  %v873_v33 = vsel %vm163_vm0, %v827_v24, 0.0 }
 0x1cf   :  { %vm727_vm11 = vcmp.gt.f32.partialorder %v631_v28, 0.0  ;;  %v759_v34 = vmul.f32 0.01, %v631_v28  ;;  %v634_v35 = vadd.f32 %v1265_v32, %v1502_v45  ;;  %v625_v36 = vpop.f32.mrb[7].mxu1  ;;  %874 = vadd.xlane.f32.xlu1 %v873_v33  ;;  %v867_v41 = vsel %vm163_vm0, %v825_v30, 0.0 }
 0x1d0   :  { %vm725_vm12 = vcmp.gt.f32.partialorder %v623_v31, 0.0  ;;  %v757_v37 = vmul.f32 0.01, %v623_v31  ;;  %v626_v38 = vadd.f32 %v1502_v45, %v625_v36 }
 0x1d1   :  { %vm728_vm13 = vcmp.gt.f32.partialorder %v634_v35, 0.0  ;;  %v760_v40 = vmul.f32 0.01, %v634_v35  ;;  %v791_v42 = vsel %vm727_vm11, %v631_v28, %v759_v34 }
 0x1d2   :  { %vm726_vm14 = vcmp.gt.f32.partialorder %v626_v38, 0.0  ;;  %v758_v43 = vmul.f32 0.01, %v626_v38  ;;  %865 = vadd.xlane.f32.xlu0 %v864_v39  ;;  %v830_v44 = vmul.f32 %v1510_v53, %v791_v42  ;;  %v789_v26 = vsel %vm725_vm12, %v623_v31, %v757_v37 }
 0x1d3   :  { %868 = vadd.xlane.f32.xlu1 %v867_v41  ;;  %v792_v46 = vsel %vm728_vm13, %v634_v35, %v760_v40  ;;  %v828_v50 = vmul.f32 %v1510_v53, %v789_v26 }
 0x1d4   :  { %v1268_v47 = vpop.f32.mrb[8].mxu1  ;;  %v882_v48 = vsel %vm163_vm0, %v830_v44, 0.0  ;;  %v831_v49 = vmul.f32 %v1510_v53, %v792_v46  ;;  %v790_v51 = vsel %vm726_vm14, %v626_v38, %v758_v43 }
 0x1d5   :  { %v647_v52 = vadd.f32 %v1268_v47, %v1502_v45  ;;  %v638_v54 = vpop.f32.mrb[9].mxu1  ;;  %v829_v55 = vmul.f32 %v1510_v53, %v790_v51  ;;  %v876_v0 = vsel %vm163_vm0, %v828_v50, 0.0 }
 0x1d6   :  { %v639_v56 = vadd.f32 %v1502_v45, %v638_v54  ;;  %v1269_v57 = vpop.f32.mrb[10].mxu1  ;;  %883 = vadd.xlane.f32.xlu0 %v882_v48  ;;  %v885_v58 = vsel %vm163_vm0, %v831_v49, 0.0 }
 0x1d7   :  { %vm731_vm15 = vcmp.gt.f32.partialorder %v647_v52, 0.0  ;;  %v763_v59 = vmul.f32 0.01, %v647_v52  ;;  %v650_v60 = vadd.f32 %v1269_v57, %v1502_v45  ;;  %v641_v61 = vpop.f32.mrb[11].mxu1  ;;  %886 = vadd.xlane.f32.xlu1 %v885_v58  ;;  %v879_v2 = vsel %vm163_vm0, %v829_v55, 0.0 }
 0x1d8   :  { %vm729_vm1 = vcmp.gt.f32.partialorder %v639_v56, 0.0  ;;  %v761_v62 = vmul.f32 0.01, %v639_v56  ;;  %v642_v63 = vadd.f32 %v1502_v45, %v641_v61 }
 0x1d9   :  { %vm732_vm2 = vcmp.gt.f32.partialorder %v650_v60, 0.0  ;;  %v764_v1 = vmul.f32 0.01, %v650_v60  ;;  %v795_v3 = vsel %vm731_vm15, %v647_v52, %v763_v59 }
 0x1da   :  { %vm730_vm3 = vcmp.gt.f32.partialorder %v642_v63, 0.0  ;;  %v762_v4 = vmul.f32 0.01, %v642_v63  ;;  %877 = vadd.xlane.f32.xlu0 %v876_v0  ;;  %v834_v5 = vmul.f32 %v1510_v53, %v795_v3  ;;  %v793_v6 = vsel %vm729_vm1, %v639_v56, %v761_v62 }
 0x1db   :  { %880 = vadd.xlane.f32.xlu1 %v879_v2  ;;  %v796_v7 = vsel %vm732_vm2, %v650_v60, %v764_v1  ;;  %v832_v11 = vmul.f32 %v1510_v53, %v793_v6 }
 0x1dc   :  { %v1272_v8 = vpop.f32.mrb[12].mxu1  ;;  %v894_v9 = vsel %vm163_vm0, %v834_v5, 0.0  ;;  %v835_v10 = vmul.f32 %v1510_v53, %v796_v7  ;;  %v794_v12 = vsel %vm730_vm3, %v642_v63, %v762_v4 }
 0x1dd   :  { %v663_v13 = vadd.f32 %v1272_v8, %v1502_v45  ;;  %v654_v14 = vpop.f32.mrb[13].mxu1  ;;  %v833_v15 = vmul.f32 %v1510_v53, %v794_v12  ;;  %v888_v24 = vsel %vm163_vm0, %v832_v11, 0.0 }
 0x1de   :  { %v655_v16 = vadd.f32 %v1502_v45, %v654_v14  ;;  %v1273_v17 = vpop.f32.mrb[14].mxu1  ;;  %895 = vadd.xlane.f32.xlu0 %v894_v9  ;;  %v897_v18 = vsel %vm163_vm0, %v835_v10, 0.0 }
 0x1df   :  { %vm735_vm4 = vcmp.gt.f32.partialorder %v663_v13, 0.0  ;;  %v767_v19 = vmul.f32 0.01, %v663_v13  ;;  %v666_v20 = vadd.f32 %v1273_v17, %v1502_v45  ;;  %v657_v21 = vpop.f32.mrb[15].mxu1  ;;  %898 = vadd.xlane.f32.xlu1 %v897_v18  ;;  %v891_v27 = vsel %vm163_vm0, %v833_v15, 0.0 }
 0x1e0   :  { %vm733_vm5 = vcmp.gt.f32.partialorder %v655_v16, 0.0  ;;  %v765_v22 = vmul.f32 0.01, %v655_v16  ;;  %v658_v23 = vadd.f32 %v1502_v45, %v657_v21 }
 0x1e1   :  { %vm736_vm6 = vcmp.gt.f32.partialorder %v666_v20, 0.0  ;;  %v768_v25 = vmul.f32 0.01, %v666_v20  ;;  %v799_v28 = vsel %vm735_vm4, %v663_v13, %v767_v19 }
 0x1e2   :  { %vm734_vm7 = vcmp.gt.f32.partialorder %v658_v23, 0.0  ;;  %v766_v29 = vmul.f32 0.01, %v658_v23  ;;  %889 = vadd.xlane.f32.xlu0 %v888_v24  ;;  %v838_v30 = vmul.f32 %v1510_v53, %v799_v28  ;;  %v797_v31 = vsel %vm733_vm5, %v655_v16, %v765_v22 }
 0x1e3   :  { %892 = vadd.xlane.f32.xlu1 %v891_v27  ;;  %v800_v32 = vsel %vm736_vm6, %v666_v20, %v768_v25  ;;  %v836_v36 = vmul.f32 %v1510_v53, %v797_v31  ;;  %vm1078_vm5 = vcmask 7168  }
 0x1e4   :  { %v1276_v33 = vpop.f32.mrb[16].mxu1  ;;  %v906_v34 = vsel %vm163_vm0, %v838_v30, 0.0  ;;  %v839_v35 = vmul.f32 %v1510_v53, %v800_v32  ;;  %v798_v37 = vsel %vm734_vm7, %v658_v23, %v766_v29 }
 0x1e5   :  { %v679_v38 = vadd.f32 %v1276_v33, %v1502_v45  ;;  %v670_v39 = vpop.f32.mrb[17].mxu1  ;;  %v837_v40 = vmul.f32 %v1510_v53, %v798_v37  ;;  %v900_v49 = vsel %vm163_vm0, %v836_v36, 0.0 }
 0x1e6   :  { %v671_v41 = vadd.f32 %v1502_v45, %v670_v39  ;;  %v1277_v42 = vpop.f32.mrb[18].mxu1  ;;  %907 = vadd.xlane.f32.xlu0 %v906_v34  ;;  %v909_v43 = vsel %vm163_vm0, %v839_v35, 0.0 }
 0x1e7   :  { %vm739_vm8 = vcmp.gt.f32.partialorder %v679_v38, 0.0  ;;  %v771_v44 = vmul.f32 0.01, %v679_v38  ;;  %v682_v26 = vadd.f32 %v1277_v42, %v1502_v45  ;;  %v673_v46 = vpop.f32.mrb[19].mxu1  ;;  %910 = vadd.xlane.f32.xlu1 %v909_v43  ;;  %v903_v51 = vsel %vm163_vm0, %v837_v40, 0.0 }
 0x1e8   :  { %vm737_vm9 = vcmp.gt.f32.partialorder %v671_v41, 0.0  ;;  %v769_v47 = vmul.f32 0.01, %v671_v41  ;;  %v674_v48 = vadd.f32 %v1502_v45, %v673_v46 }
 0x1e9   :  { %vm740_vm10 = vcmp.gt.f32.partialorder %v682_v26, 0.0  ;;  %v772_v50 = vmul.f32 0.01, %v682_v26  ;;  %v803_v52 = vsel %vm739_vm8, %v679_v38, %v771_v44 }
 0x1ea   :  { %vm738_vm11 = vcmp.gt.f32.partialorder %v674_v48, 0.0  ;;  %v770_v54 = vmul.f32 0.01, %v674_v48  ;;  %901 = vadd.xlane.f32.xlu0 %v900_v49  ;;  %v842_v55 = vmul.f32 %v1510_v53, %v803_v52  ;;  %v801_v56 = vsel %vm737_vm9, %v671_v41, %v769_v47 }
 0x1eb   :  { %904 = vadd.xlane.f32.xlu1 %v903_v51  ;;  %v804_v57 = vsel %vm740_vm10, %v682_v26, %v772_v50  ;;  %v840_v61 = vmul.f32 %v1510_v53, %v801_v56  ;;  %v1609_v50 = vstv %s1777_s6 }
 0x1ec   :  { %v1280_v58 = vpop.f32.mrb[20].mxu1  ;;  %v918_v59 = vsel %vm163_vm0, %v842_v55, 0.0  ;;  %v843_v60 = vmul.f32 %v1510_v53, %v804_v57  ;;  %v802_v62 = vsel %vm738_vm11, %v674_v48, %v770_v54 }
 0x1ed   :  { %v695_v63 = vadd.f32 %v1280_v58, %v1502_v45  ;;  %v686_v0 = vpop.f32.mrb[21].mxu1  ;;  %v841_v1 = vmul.f32 %v1510_v53, %v802_v62  ;;  %v912_v10 = vsel %vm163_vm0, %v840_v61, 0.0 }
 0x1ee   :  { %v687_v2 = vadd.f32 %v1502_v45, %v686_v0  ;;  %v1281_v3 = vpop.f32.mrb[22].mxu1  ;;  %919 = vadd.xlane.f32.xlu0 %v918_v59  ;;  %v921_v4 = vsel %vm163_vm0, %v843_v60, 0.0 }
 0x1ef   :  { %vm743_vm12 = vcmp.gt.f32.partialorder %v695_v63, 0.0  ;;  %v775_v5 = vmul.f32 0.01, %v695_v63  ;;  %v698_v6 = vadd.f32 %v1281_v3, %v1502_v45  ;;  %v689_v7 = vpop.f32.mrb[23].mxu1  ;;  %922 = vadd.xlane.f32.xlu1 %v921_v4  ;;  %v915_v12 = vsel %vm163_vm0, %v841_v1, 0.0 }
 0x1f0   :  { %vm741_vm13 = vcmp.gt.f32.partialorder %v687_v2, 0.0  ;;  %v773_v8 = vmul.f32 0.01, %v687_v2  ;;  %v690_v9 = vadd.f32 %v1502_v45, %v689_v7 }
 0x1f1   :  { %vm744_vm14 = vcmp.gt.f32.partialorder %v698_v6, 0.0  ;;  %v776_v11 = vmul.f32 0.01, %v698_v6  ;;  %v807_v13 = vsel %vm743_vm12, %v695_v63, %v775_v5 }
 0x1f2   :  { %vm742_vm15 = vcmp.gt.f32.partialorder %v690_v9, 0.0  ;;  %v774_v14 = vmul.f32 0.01, %v690_v9  ;;  %913 = vadd.xlane.f32.xlu0 %v912_v10  ;;  %v846_v15 = vmul.f32 %v1510_v53, %v807_v13  ;;  %v805_v16 = vsel %vm741_vm13, %v687_v2, %v773_v8 }
 0x1f3   :  { %916 = vadd.xlane.f32.xlu1 %v915_v12  ;;  %v808_v17 = vsel %vm744_vm14, %v698_v6, %v776_v11  ;;  %v844_v24 = vmul.f32 %v1510_v53, %v805_v16 }
 0x1f4   :  { %v1284_v18 = vpop.f32.mrb[24].mxu1  ;;  %v930_v19 = vsel %vm163_vm0, %v846_v15, 0.0  ;;  %v847_v20 = vmul.f32 %v1510_v53, %v808_v17  ;;  %v806_v21 = vsel %vm742_vm15, %v690_v9, %v774_v14 }
 0x1f5   :  { %v711_v22 = vadd.f32 %v1284_v18, %v1502_v45  ;;  %v702_v23 = vpop.f32.mrb[25].mxu1  ;;  %v845_v25 = vmul.f32 %v1510_v53, %v806_v21  ;;  %v924_v36 = vsel %vm163_vm0, %v844_v24, 0.0 }
 0x1f6   :  { %v703_v27 = vadd.f32 %v1502_v45, %v702_v23  ;;  %v1285_v28 = vpop.f32.mrb[26].mxu1  ;;  %931 = vadd.xlane.f32.xlu0 %v930_v19  ;;  %v933_v29 = vsel %vm163_vm0, %v847_v20, 0.0 }
 0x1f7   :  { %vm747_vm1 = vcmp.gt.f32.partialorder %v711_v22, 0.0  ;;  %v779_v30 = vmul.f32 0.01, %v711_v22  ;;  %v714_v31 = vadd.f32 %v1285_v28, %v1502_v45  ;;  %v705_v32 = vpop.f32.mrb[27].mxu1  ;;  %934 = vadd.xlane.f32.xlu1 %v933_v29  ;;  %v927_v37 = vsel %vm163_vm0, %v845_v25, 0.0 }
 0x1f8   :  { %vm745_vm2 = vcmp.gt.f32.partialorder %v703_v27, 0.0  ;;  %v777_v33 = vmul.f32 0.01, %v703_v27  ;;  %v706_v34 = vadd.f32 %v1502_v45, %v705_v32 }
 0x1f9   :  { %vm748_vm3 = vcmp.gt.f32.partialorder %v714_v31, 0.0  ;;  %v780_v35 = vmul.f32 0.01, %v714_v31  ;;  %v811_v40 = vsel %vm747_vm1, %v711_v22, %v779_v30 }
 0x1fa   :  { %vm746_vm4 = vcmp.gt.f32.partialorder %v706_v34, 0.0  ;;  %v778_v38 = vmul.f32 0.01, %v706_v34  ;;  %925 = vadd.xlane.f32.xlu0 %v924_v36  ;;  %v809_v39 = vsel %vm745_vm2, %v703_v27, %v777_v33  ;;  %v850_v26 = vmul.f32 %v1510_v53, %v811_v40 }
 0x1fb   :  { %928 = vadd.xlane.f32.xlu1 %v927_v37  ;;  %v848_v41 = vmul.f32 %v1510_v53, %v809_v39  ;;  %v812_v43 = vsel %vm748_vm3, %v714_v31, %v780_v35 }
 0x1fc   :  { %v810_v42 = vsel %vm746_vm4, %v706_v34, %v778_v38  ;;  %v851_v47 = vmul.f32 %v1510_v53, %v812_v43  ;;  %v942_v48 = vsel %vm163_vm0, %v850_v26, 0.0 }
 0x1fd   :  { %v936_v44 = vsel %vm163_vm0, %v848_v41, 0.0  ;;  %v849_v45 = vmul.f32 %v1510_v53, %v810_v42 }
 0x1fe   :  { %937 = vadd.xlane.f32.xlu0 %v936_v44  ;;  %v945_v49 = vsel %vm163_vm0, %v851_v47, 0.0 }
 0x1ff   :  { %v939_v46 = vsel %vm163_vm0, %v849_v45, 0.0 }
 0x200   :  { %940 = vadd.xlane.f32.xlu1 %v939_v46 }
 0x202   :  { %943 = vadd.xlane.f32.xlu0 %v942_v48 }
 0x204   :  { %946 = vadd.xlane.f32.xlu1 %v945_v49 }
 0x252   :  { %v860_v51 = vpop.xlane.xlu1 %859 }
 0x253   :  { %v952_v52 = vadd.f32 %v1609_v50, %v860_v51  ;;  %v854_v54 = vpop.xlane.xlu0 %853 }
 0x254   :  { %v950_v55 = vadd.f32 %v1609_v50, %v854_v54 }
 0x255   :  { %vm984_vm6 = vcmp.gt.f32.partialorder %v952_v52, 0.0  ;;  %v1016_v53 = vmul.f32 0.01, %v952_v52 }
 0x256   :  { %vm982_vm7 = vcmp.gt.f32.partialorder %v950_v55, 0.0  ;;  %v1014_v56 = vmul.f32 0.01, %v950_v55  ;;  %v863_v57 = vpop.xlane.xlu1 %862 }
 0x257   :  { %v1048_v58 = vsel %vm984_vm6, %v952_v52, %v1016_v53  ;;  %v953_v59 = vadd.f32 %v1609_v50, %v863_v57  ;;  %v857_v60 = vpop.xlane.xlu0 %856 }
 0x258   :  { %1081 = vst.msk [vmem:[%s1778_s7 + $0x10] sm:$0xff] %vm1078_vm5, %v1048_v58  ;;  %v1046_v61 = vsel %vm982_vm7, %v950_v55, %v1014_v56  ;;  %v951_v62 = vadd.f32 %v1609_v50, %v857_v60 }
 0x259   :  { %1079 = vst.msk [vmem:[%s1778_s7] sm:$0xff] %vm1078_vm5, %v1046_v61  ;;  %vm985_vm0 = vcmp.gt.f32.partialorder %v953_v59, 0.0  ;;  %v1017_v63 = vmul.f32 0.01, %v953_v59 }
 0x25a   :  { %vm983_vm8 = vcmp.gt.f32.partialorder %v951_v62, 0.0  ;;  %v1015_v0 = vmul.f32 0.01, %v951_v62 }
 0x25b   :  { %v1049_v1 = vsel %vm985_vm0, %v953_v59, %v1017_v63  ;;  %v872_v2 = vpop.xlane.xlu0 %871 }
 0x25c   :  { %1082 = vst.msk [vmem:[%s1778_s7 + $0x18] sm:$0xff] %vm1078_vm5, %v1049_v1  ;;  %v1047_v3 = vsel %vm983_vm8, %v951_v62, %v1015_v0  ;;  %v956_v4 = vadd.f32 %v1609_v50, %v872_v2  ;;  %v875_v5 = vpop.xlane.xlu1 %874 }
 0x25d   :  { %1080 = vst.msk [vmem:[%s1778_s7 + $0x8] sm:$0xff] %vm1078_vm5, %v1047_v3  ;;  %v957_v6 = vadd.f32 %v1609_v50, %v875_v5 }
 0x25e   :  { %vm988_vm9 = vcmp.gt.f32.partialorder %v956_v4, 0.0  ;;  %v1020_v7 = vmul.f32 0.01, %v956_v4 }
 0x25f   :  { %vm989_vm10 = vcmp.gt.f32.partialorder %v957_v6, 0.0  ;;  %v1021_v8 = vmul.f32 0.01, %v957_v6  ;;  %v866_v9 = vpop.xlane.xlu0 %865 }
 0x260   :  { %v1052_v10 = vsel %vm988_vm9, %v956_v4, %v1020_v7  ;;  %v954_v11 = vadd.f32 %v1609_v50, %v866_v9  ;;  %v869_v12 = vpop.xlane.xlu1 %868 }
 0x261   :  { %1085 = vst.msk [vmem:[%s1778_s7 + $0x30] sm:$0xff] %vm1078_vm5, %v1052_v10  ;;  %v1053_v13 = vsel %vm989_vm10, %v957_v6, %v1021_v8  ;;  %v955_v14 = vadd.f32 %v1609_v50, %v869_v12 }
 0x262   :  { %1086 = vst.msk [vmem:[%s1778_s7 + $0x38] sm:$0xff] %vm1078_vm5, %v1053_v13  ;;  %vm986_vm11 = vcmp.gt.f32.partialorder %v954_v11, 0.0  ;;  %v1018_v15 = vmul.f32 0.01, %v954_v11 }
 0x263   :  { %vm987_vm12 = vcmp.gt.f32.partialorder %v955_v14, 0.0  ;;  %v1019_v16 = vmul.f32 0.01, %v955_v14  ;;  %v884_v17 = vpop.xlane.xlu0 %883 }
 0x264   :  { %v1050_v18 = vsel %vm986_vm11, %v954_v11, %v1018_v15  ;;  %v960_v19 = vadd.f32 %v1609_v50, %v884_v17  ;;  %v887_v20 = vpop.xlane.xlu1 %886 }
 0x265   :  { %1083 = vst.msk [vmem:[%s1778_s7 + $0x20] sm:$0xff] %vm1078_vm5, %v1050_v18  ;;  %v1051_v21 = vsel %vm987_vm12, %v955_v14, %v1019_v16  ;;  %v961_v22 = vadd.f32 %v1609_v50, %v887_v20 }
 0x266   :  { %1084 = vst.msk [vmem:[%s1778_s7 + $0x28] sm:$0xff] %vm1078_vm5, %v1051_v21  ;;  %vm992_vm13 = vcmp.gt.f32.partialorder %v960_v19, 0.0  ;;  %v1024_v23 = vmul.f32 0.01, %v960_v19 }
 0x267   :  { %vm993_vm14 = vcmp.gt.f32.partialorder %v961_v22, 0.0  ;;  %v1025_v24 = vmul.f32 0.01, %v961_v22  ;;  %v878_v25 = vpop.xlane.xlu0 %877 }
 0x268   :  { %v1056_v27 = vsel %vm992_vm13, %v960_v19, %v1024_v23  ;;  %v958_v28 = vadd.f32 %v1609_v50, %v878_v25  ;;  %v881_v29 = vpop.xlane.xlu1 %880 }
 0x269   :  { %1089 = vst.msk [vmem:[%s1778_s7 + $0x50] sm:$0xff] %vm1078_vm5, %v1056_v27  ;;  %v1057_v30 = vsel %vm993_vm14, %v961_v22, %v1025_v24  ;;  %v959_v31 = vadd.f32 %v1609_v50, %v881_v29 }
 0x26a   :  { %1090 = vst.msk [vmem:[%s1778_s7 + $0x58] sm:$0xff] %vm1078_vm5, %v1057_v30  ;;  %vm990_vm15 = vcmp.gt.f32.partialorder %v958_v28, 0.0  ;;  %v1022_v32 = vmul.f32 0.01, %v958_v28 }
 0x26b   :  { %vm991_vm1 = vcmp.gt.f32.partialorder %v959_v31, 0.0  ;;  %v1023_v33 = vmul.f32 0.01, %v959_v31  ;;  %v896_v34 = vpop.xlane.xlu0 %895 }
 0x26c   :  { %v1054_v35 = vsel %vm990_vm15, %v958_v28, %v1022_v32  ;;  %v964_v36 = vadd.f32 %v1609_v50, %v896_v34  ;;  %v899_v37 = vpop.xlane.xlu1 %898 }
 0x26d   :  { %1087 = vst.msk [vmem:[%s1778_s7 + $0x40] sm:$0xff] %vm1078_vm5, %v1054_v35  ;;  %v1055_v38 = vsel %vm991_vm1, %v959_v31, %v1023_v33  ;;  %v965_v39 = vadd.f32 %v1609_v50, %v899_v37 }
 0x26e   :  { %1088 = vst.msk [vmem:[%s1778_s7 + $0x48] sm:$0xff] %vm1078_vm5, %v1055_v38  ;;  %vm996_vm2 = vcmp.gt.f32.partialorder %v964_v36, 0.0  ;;  %v1028_v40 = vmul.f32 0.01, %v964_v36 }
 0x26f   :  { %vm997_vm3 = vcmp.gt.f32.partialorder %v965_v39, 0.0  ;;  %v1029_v41 = vmul.f32 0.01, %v965_v39  ;;  %v890_v42 = vpop.xlane.xlu0 %889 }
 0x270   :  { %v1060_v43 = vsel %vm996_vm2, %v964_v36, %v1028_v40  ;;  %v962_v44 = vadd.f32 %v1609_v50, %v890_v42  ;;  %v893_v45 = vpop.xlane.xlu1 %892 }
 0x271   :  { %1093 = vst.msk [vmem:[%s1778_s7 + $0x70] sm:$0xff] %vm1078_vm5, %v1060_v43  ;;  %v1061_v26 = vsel %vm997_vm3, %v965_v39, %v1029_v41  ;;  %v963_v46 = vadd.f32 %v1609_v50, %v893_v45 }
 0x272   :  { %1094 = vst.msk [vmem:[%s1778_s7 + $0x78] sm:$0xff] %vm1078_vm5, %v1061_v26  ;;  %vm994_vm4 = vcmp.gt.f32.partialorder %v962_v44, 0.0  ;;  %v1026_v47 = vmul.f32 0.01, %v962_v44 }
 0x273   :  { %vm995_vm6 = vcmp.gt.f32.partialorder %v963_v46, 0.0  ;;  %v1027_v48 = vmul.f32 0.01, %v963_v46  ;;  %v908_v49 = vpop.xlane.xlu0 %907 }
 0x274   :  { %v1058_v51 = vsel %vm994_vm4, %v962_v44, %v1026_v47  ;;  %v968_v52 = vadd.f32 %v1609_v50, %v908_v49  ;;  %v911_v54 = vpop.xlane.xlu1 %910 }
 0x275   :  { %1091 = vst.msk [vmem:[%s1778_s7 + $0x60] sm:$0xff] %vm1078_vm5, %v1058_v51  ;;  %v1059_v55 = vsel %vm995_vm6, %v963_v46, %v1027_v48  ;;  %v969_v53 = vadd.f32 %v1609_v50, %v911_v54 }
 0x276   :  { %1092 = vst.msk [vmem:[%s1778_s7 + $0x68] sm:$0xff] %vm1078_vm5, %v1059_v55  ;;  %vm1000_vm7 = vcmp.gt.f32.partialorder %v968_v52, 0.0  ;;  %v1032_v56 = vmul.f32 0.01, %v968_v52 }
 0x277   :  { %vm1001_vm0 = vcmp.gt.f32.partialorder %v969_v53, 0.0  ;;  %v1033_v57 = vmul.f32 0.01, %v969_v53  ;;  %v902_v58 = vpop.xlane.xlu0 %901 }
 0x278   :  { %v1064_v59 = vsel %vm1000_vm7, %v968_v52, %v1032_v56  ;;  %v966_v60 = vadd.f32 %v1609_v50, %v902_v58  ;;  %v905_v61 = vpop.xlane.xlu1 %904 }
 0x279   :  { %1097 = vst.msk [vmem:[%s1778_s7 + $0x90] sm:$0xff] %vm1078_vm5, %v1064_v59  ;;  %v1065_v62 = vsel %vm1001_vm0, %v969_v53, %v1033_v57  ;;  %v967_v63 = vadd.f32 %v1609_v50, %v905_v61 }
 0x27a   :  { %1098 = vst.msk [vmem:[%s1778_s7 + $0x98] sm:$0xff] %vm1078_vm5, %v1065_v62  ;;  %vm998_vm8 = vcmp.gt.f32.partialorder %v966_v60, 0.0  ;;  %v1030_v0 = vmul.f32 0.01, %v966_v60 }
 0x27b   :  { %vm999_vm9 = vcmp.gt.f32.partialorder %v967_v63, 0.0  ;;  %v1031_v1 = vmul.f32 0.01, %v967_v63  ;;  %v920_v2 = vpop.xlane.xlu0 %919 }
 0x27c   :  { %v1062_v3 = vsel %vm998_vm8, %v966_v60, %v1030_v0  ;;  %v972_v4 = vadd.f32 %v1609_v50, %v920_v2  ;;  %v923_v5 = vpop.xlane.xlu1 %922 }
 0x27d   :  { %1095 = vst.msk [vmem:[%s1778_s7 + $0x80] sm:$0xff] %vm1078_vm5, %v1062_v3  ;;  %v1063_v6 = vsel %vm999_vm9, %v967_v63, %v1031_v1  ;;  %v973_v7 = vadd.f32 %v1609_v50, %v923_v5 }
 0x27e   :  { %1096 = vst.msk [vmem:[%s1778_s7 + $0x88] sm:$0xff] %vm1078_vm5, %v1063_v6  ;;  %vm1004_vm10 = vcmp.gt.f32.partialorder %v972_v4, 0.0  ;;  %v1036_v8 = vmul.f32 0.01, %v972_v4 }
 0x27f   :  { %vm1005_vm11 = vcmp.gt.f32.partialorder %v973_v7, 0.0  ;;  %v1037_v9 = vmul.f32 0.01, %v973_v7  ;;  %v914_v10 = vpop.xlane.xlu0 %913 }
 0x280   :  { %v1068_v11 = vsel %vm1004_vm10, %v972_v4, %v1036_v8  ;;  %v970_v12 = vadd.f32 %v1609_v50, %v914_v10  ;;  %v917_v13 = vpop.xlane.xlu1 %916 }
 0x281   :  { %1101 = vst.msk [vmem:[%s1778_s7 + $0xb0] sm:$0xff] %vm1078_vm5, %v1068_v11  ;;  %v1069_v14 = vsel %vm1005_vm11, %v973_v7, %v1037_v9  ;;  %v971_v15 = vadd.f32 %v1609_v50, %v917_v13 }
 0x282   :  { %1102 = vst.msk [vmem:[%s1778_s7 + $0xb8] sm:$0xff] %vm1078_vm5, %v1069_v14  ;;  %vm1002_vm12 = vcmp.gt.f32.partialorder %v970_v12, 0.0  ;;  %v1034_v16 = vmul.f32 0.01, %v970_v12 }
 0x283   :  { %vm1003_vm13 = vcmp.gt.f32.partialorder %v971_v15, 0.0  ;;  %v1035_v17 = vmul.f32 0.01, %v971_v15  ;;  %v932_v18 = vpop.xlane.xlu0 %931 }
 0x284   :  { %v1066_v19 = vsel %vm1002_vm12, %v970_v12, %v1034_v16  ;;  %v976_v20 = vadd.f32 %v1609_v50, %v932_v18  ;;  %v935_v21 = vpop.xlane.xlu1 %934 }
 0x285   :  { %1099 = vst.msk [vmem:[%s1778_s7 + $0xa0] sm:$0xff] %vm1078_vm5, %v1066_v19  ;;  %v1067_v22 = vsel %vm1003_vm13, %v971_v15, %v1035_v17  ;;  %v977_v23 = vadd.f32 %v1609_v50, %v935_v21 }
 0x286   :  { %1100 = vst.msk [vmem:[%s1778_s7 + $0xa8] sm:$0xff] %vm1078_vm5, %v1067_v22  ;;  %vm1008_vm14 = vcmp.gt.f32.partialorder %v976_v20, 0.0  ;;  %v1040_v24 = vmul.f32 0.01, %v976_v20 }
 0x287   :  { %vm1009_vm15 = vcmp.gt.f32.partialorder %v977_v23, 0.0  ;;  %v1041_v25 = vmul.f32 0.01, %v977_v23  ;;  %v926_v27 = vpop.xlane.xlu0 %925 }
 0x288   :  { %v1072_v28 = vsel %vm1008_vm14, %v976_v20, %v1040_v24  ;;  %v974_v29 = vadd.f32 %v1609_v50, %v926_v27  ;;  %v929_v30 = vpop.xlane.xlu1 %928 }
 0x289   :  { %1105 = vst.msk [vmem:[%s1778_s7 + $0xd0] sm:$0xff] %vm1078_vm5, %v1072_v28  ;;  %v1073_v31 = vsel %vm1009_vm15, %v977_v23, %v1041_v25  ;;  %v975_v32 = vadd.f32 %v1609_v50, %v929_v30 }
 0x28a   :  { %1106 = vst.msk [vmem:[%s1778_s7 + $0xd8] sm:$0xff] %vm1078_vm5, %v1073_v31  ;;  %vm1006_vm1 = vcmp.gt.f32.partialorder %v974_v29, 0.0  ;;  %v1038_v33 = vmul.f32 0.01, %v974_v29 }
 0x28b   :  { %vm1007_vm2 = vcmp.gt.f32.partialorder %v975_v32, 0.0  ;;  %v1039_v34 = vmul.f32 0.01, %v975_v32  ;;  %v938_v35 = vpop.xlane.xlu0 %937 }
 0x28c   :  { %v1070_v36 = vsel %vm1006_vm1, %v974_v29, %v1038_v33  ;;  %v978_v37 = vadd.f32 %v1609_v50, %v938_v35 }
 0x28d   :  { %1103 = vst.msk [vmem:[%s1778_s7 + $0xc0] sm:$0xff] %vm1078_vm5, %v1070_v36  ;;  %v1071_v38 = vsel %vm1007_vm2, %v975_v32, %v1039_v34  ;;  %v941_v39 = vpop.xlane.xlu1 %940 }
 0x28e   :  { %1104 = vst.msk [vmem:[%s1778_s7 + $0xc8] sm:$0xff] %vm1078_vm5, %v1071_v38  ;;  %vm1010_vm3 = vcmp.gt.f32.partialorder %v978_v37, 0.0  ;;  %v1042_v40 = vmul.f32 0.01, %v978_v37  ;;  %v979_v41 = vadd.f32 %v1609_v50, %v941_v39 }
 0x28f   :  { %v944_v42 = vpop.xlane.xlu0 %943 }
 0x290   :  { %v1074_v43 = vsel %vm1010_vm3, %v978_v37, %v1042_v40  ;;  %vm1011_vm4 = vcmp.gt.f32.partialorder %v979_v41, 0.0  ;;  %v1043_v44 = vmul.f32 0.01, %v979_v41  ;;  %v980_v45 = vadd.f32 %v1609_v50, %v944_v42 }
 0x291   :  { %1107 = vst.msk [vmem:[%s1778_s7 + $0xe0] sm:$0xff] %vm1078_vm5, %v1074_v43  ;;  %v947_v26 = vpop.xlane.xlu1 %946 }
 0x292   :  { %v1075_v46 = vsel %vm1011_vm4, %v979_v41, %v1043_v44  ;;  %vm1012_vm6 = vcmp.gt.f32.partialorder %v980_v45, 0.0  ;;  %v1044_v47 = vmul.f32 0.01, %v980_v45  ;;  %v981_v48 = vadd.f32 %v1609_v50, %v947_v26 }
 0x293   :  { %1108 = vst.msk [vmem:[%s1778_s7 + $0xe8] sm:$0xff] %vm1078_vm5, %v1075_v46 }
 0x294   :  { %v1076_v49 = vsel %vm1012_vm6, %v980_v45, %v1044_v47  ;;  %vm1013_vm7 = vcmp.gt.f32.partialorder %v981_v48, 0.0  ;;  %v1045_v51 = vmul.f32 0.01, %v981_v48 }
 0x295   :  { %1109 = vst.msk [vmem:[%s1778_s7 + $0xf0] sm:$0xff] %vm1078_vm5, %v1076_v49 }
 0x296   :  { %v1077_v52 = vsel %vm1013_vm7, %v981_v48, %v1045_v51 }
 0x297   :  { %1110 = vst.msk [vmem:[%s1778_s7 + $0xf8] sm:$0xff] %vm1078_vm5, %v1077_v52 }

</bundles_post_ra>
